<compile_context>
chip_gen: v6e
topology: v6e:2x2x1
jax: 0.10.0
libtpu: 0.0.40
codegen_flags: <defaults>
</compile_context>

<pallas_src>
import functools

import jax
import jax.numpy as jnp
from jax.experimental import pallas as pl
from jax.experimental.pallas import tpu as pltpu


def _round_up(x, m):
    return (x + m - 1) // m * m


def _choose_tile_m(M):
    # Multiple of 16 for bf16 sublane packing; one tile when M <= 1024,
    # otherwise near-even tiles so M_pad stays close to M (review item 8).
    if M <= 1024:
        return _round_up(M, 16)
    n_tiles = -(-M // 1024)
    return _round_up(-(-M // n_tiles), 16)


# ----------------------------------------------------------------------------
# Kernel 1: conv (as im2col matmul) + folded BatchNorm affine + ReLU
# ----------------------------------------------------------------------------
def _conv_bn_relu_kernel(p_ref, w_ref, scale_ref, bias_ref, o_ref):
    # p_ref:     (tm, Kc_p)    bf16 im2col patch tile
    # w_ref:     (Kc_p, hid_p) bf16 reshaped conv weight (zero padded)
    # scale_ref: (1, hid_p)    f32 folded BN scale (zero in padded channels)
    # bias_ref:  (1, hid_p)    f32 folded bias     (zero in padded channels)
    acc = jnp.dot(p_ref[...], w_ref[...], preferred_element_type=jnp.float32)
    out = jnp.maximum(acc * scale_ref[...] + bias_ref[...], 0.0)   # f32 epilogue
    o_ref[...] = out.astype(o_ref.dtype)


def conv_bn_relu(patches, w_mat, scale, bias, *, tm):
    M_pad, Kc_p = patches.shape
    hid_p = w_mat.shape[1]
    grid = (M_pad // tm,)
    flops = 2 * M_pad * Kc_p * hid_p
    bytes_accessed = (M_pad * Kc_p * 2 + Kc_p * hid_p * 2
                      + 2 * hid_p * 4 + M_pad * hid_p * 2)
    # No vmem_limit_bytes override: the default scoped limit is ample for these
    # tiles and 64 MiB is the entire physical VMEM on v7x (review item 6).
    return pl.pallas_call(
        _conv_bn_relu_kernel,
        out_shape=jax.ShapeDtypeStruct((M_pad, hid_p), jnp.bfloat16),
        grid=grid,
        in_specs=[
            pl.BlockSpec((tm, Kc_p), lambda i: (i, 0)),
            pl.BlockSpec((Kc_p, hid_p), lambda i: (0, 0)),
            pl.BlockSpec((1, hid_p), lambda i: (0, 0)),
            pl.BlockSpec((1, hid_p), lambda i: (0, 0)),
        ],
        out_specs=pl.BlockSpec((tm, hid_p), lambda i: (i, 0)),
        compiler_params=pltpu.CompilerParams(
            dimension_semantics=("parallel",)),
        cost_estimate=pl.CostEstimate(flops=flops, transcendentals=0,
                                      bytes_accessed=bytes_accessed),
    )(patches, w_mat, scale, bias)


# ----------------------------------------------------------------------------
# Kernel 2: Linear classifier + label-smoothed cross-entropy loss
#           (grid over the F contraction axis, accumulate-in-output logits,
#            log-softmax / loss epilogue on the last step)
# ----------------------------------------------------------------------------
def _classifier_loss_kernel(f_ref, w_ref, b_ref, lab_ref, logits_ref, loss_ref,
                            *, num_classes, label_smoothing):
    # f_ref:   (N, tf)        bf16 feature tile ((h, w, c) order)
    # w_ref:   (tf, K_pad)    bf16 permuted + padded Linear weight tile
    # b_ref:   (1, K_pad)     f32  padded bias
    # lab_ref: (N, 1)         int32 labels
    k = pl.program_id(0)
    part = jnp.dot(f_ref[...], w_ref[...], preferred_element_type=jnp.float32)

    @pl.when(k == 0)
    def _init():
        logits_ref[...] = part + b_ref[...]

    @pl.when(k > 0)
    def _accum():
        logits_ref[...] = logits_ref[...] + part

    @pl.when(k == pl.num_programs(0) - 1)
    def _epilogue():
        logits = logits_ref[...]
        col = jax.lax.broadcasted_iota(jnp.int32, logits.shape, 1)
        valid = col < num_classes
        logits_m = jnp.where(valid, logits, jnp.float32(-1e30))
        logits_ref[...] = logits_m                          # lane-dense f32 store

        # numerically-stable log-softmax over the true classes only
        m = jnp.max(logits_m, axis=-1, keepdims=True)
        sumexp = jnp.sum(jnp.where(valid, jnp.exp(logits_m - m), 0.0),
                         axis=-1, keepdims=True)
        lse = jnp.log(sumexp) + m
        logp = logits_m - lse                               # (N, K_pad)

        onehot = (col == lab_ref[...]).astype(jnp.float32)
        tgt_lp = jnp.sum(jnp.where(valid, onehot * logp, 0.0),
                         axis=-1, keepdims=True)            # (N, 1)
        mean_lp = jnp.sum(jnp.where(valid, logp, 0.0),
                          axis=-1, keepdims=True) / num_classes
        eps = label_smoothing
        per_sample = -((1.0 - eps) * tgt_lp + eps * mean_lp)
        loss_ref[0, 0] = jnp.sum(per_sample) / per_sample.shape[0]


def classifier_with_loss(feats, w2, bias, labels, *, tf, num_classes,
                         label_smoothing):
    N, F_pad = feats.shape
    K_pad = w2.shape[1]
    grid = (F_pad // tf,)
    flops = 2 * N * F_pad * K_pad
    bytes_accessed = (N * F_pad * 2 + F_pad * K_pad * 2 + K_pad * 4
                      + N * 4 + N * K_pad * 4 + 4)
    logits, loss = pl.pallas_call(
        functools.partial(_classifier_loss_kernel,
                          num_classes=num_classes,
                          label_smoothing=label_smoothing),
        out_shape=(jax.ShapeDtypeStruct((N, K_pad), jnp.float32),
                   jax.ShapeDtypeStruct((1, 1), jnp.float32)),
        grid=grid,
        in_specs=[
            pl.BlockSpec((N, tf), lambda k: (0, k)),
            pl.BlockSpec((tf, K_pad), lambda k: (k, 0)),
            pl.BlockSpec((1, K_pad), lambda k: (0, 0)),
            pl.BlockSpec((N, 1), lambda k: (0, 0)),
        ],
        out_specs=(
            pl.BlockSpec((N, K_pad), lambda k: (0, 0)),
            pl.BlockSpec(memory_space=pltpu.MemorySpace.SMEM),
        ),
        compiler_params=pltpu.CompilerParams(
            dimension_semantics=("arbitrary",)),
        cost_estimate=pl.CostEstimate(flops=flops, transcendentals=N * K_pad,
                                      bytes_accessed=bytes_accessed),
    )(feats, w2, bias, labels)
    return logits, loss[0, 0]


# ----------------------------------------------------------------------------
# Full forward pass (glue in plain JAX, hot paths in the kernels above)
# ----------------------------------------------------------------------------
def iccnn_forward(images, labels, params, *, label_smoothing):
    N, C, H, W = images.shape
    h_out = (H - (3 - 1) - 1) // 2 + 1
    w_out = (W - (3 - 1) - 1) // 2 + 1
    hidden = params["conv_w"].shape[0]
    num_labels = params["fc_w"].shape[0]

    Kc = C * 9
    M = N * h_out * w_out

    # Review item 1: contraction dim padded to a multiple of 8 only (not 128).
    Kc_p = _round_up(Kc, 8)
    # Review item 4: pad channels to 128 only when hidden >= 128; otherwise a
    # multiple of 8 so the fc-weight contraction is not inflated.
    hid_p = _round_up(hidden, 128) if hidden >= 128 else _round_up(hidden, 8)
    K_pad = _round_up(num_labels, 128)        # lane-dense logits

    tm = _choose_tile_m(M)
    M_pad = _round_up(M, tm)

    # --- im2col emitted in (N, ho, wo, C*9) layout from an NHWC bf16 view.
    # Feature order is (ic, kh, kw), matching PyTorch conv-weight flattening.
    imgs = jnp.transpose(images, (0, 2, 3, 1)).astype(jnp.bfloat16)   # (N,H,W,C)
    taps = []
    for kh in range(3):
        for kw in range(3):
            taps.append(imgs[:, kh:kh + 2 * h_out:2, kw:kw + 2 * w_out:2, :])
    patches = jnp.stack(taps, axis=-1)                  # (N, ho, wo, C, 9)
    patches = patches.reshape(M, Kc)
    patches = jnp.pad(patches, ((0, M_pad - M), (0, Kc_p - Kc)))

    # --- conv weight (hidden, C, 3, 3) -> (Kc_p, hid_p); fold BN (eval) affine.
    w_mat = params["conv_w"].reshape(hidden, Kc).T
    w_mat = jnp.pad(w_mat, ((0, Kc_p - Kc),
                            (0, hid_p - hidden))).astype(jnp.bfloat16)
    bn_scale = params["bn_gamma"] / jnp.sqrt(params["bn_var"] + 1e-5)
    fused_scale = jnp.pad(bn_scale, (0, hid_p - hidden)).reshape(1, hid_p)
    fused_scale = fused_scale.astype(jnp.float32)
    fused_bias = (bn_scale * (params["conv_b"] - params["bn_mean"])
                  + params["bn_beta"])
    fused_bias = jnp.pad(fused_bias, (0, hid_p - hidden)).reshape(1, hid_p)
    fused_bias = fused_bias.astype(jnp.float32)

    hs = conv_bn_relu(patches, w_mat, fused_scale, fused_bias, tm=tm)
    # Dropout: identity in eval mode.

    # --- classifier features stay in (h, w, c) order (no activation transpose);
    # the fc weight is permuted to match once at trace time.
    F = h_out * w_out * hid_p
    feats = hs[:M].reshape(N, F)                                    # bf16, view

    # F-axis (contraction) tile for kernel 2: multiple of 128; one tile when the
    # model is small, capped at 2048 so VMEM stays bounded at scale (item 5).
    F128 = _round_up(F, 128)
    tf = F128 if F128 <= 2048 else 2048
    F_pad = _round_up(F, tf)
    feats = jnp.pad(feats, ((0, 0), (0, F_pad - F)))

    fc_w = params["fc_w"].reshape(num_labels, hidden, h_out, w_out)
    fc_w = jnp.transpose(fc_w, (0, 2, 3, 1))                        # (K,ho,wo,hid)
    fc_w = jnp.pad(fc_w, ((0, K_pad - num_labels), (0, 0), (0, 0),
                          (0, hid_p - hidden)))
    w2 = fc_w.reshape(K_pad, F).T.astype(jnp.bfloat16)              # (F, K_pad)
    w2 = jnp.pad(w2, ((0, F_pad - F), (0, 0)))
    fc_b = jnp.pad(params["fc_b"], (0, K_pad - num_labels))
    fc_b = fc_b.reshape(1, K_pad).astype(jnp.float32)
    labels_2d = labels.reshape(N, 1).astype(jnp.int32)

    logits_pad, loss = classifier_with_loss(
        feats, w2, fc_b, labels_2d, tf=tf,
        num_classes=num_labels, label_smoothing=label_smoothing)
    logits = logits_pad[:, :num_labels]

    acc = jnp.mean((jnp.argmax(logits, axis=-1) == labels).astype(jnp.float32))
    return {"loss": loss, "logits": logits,
            "stats": {"loss": loss, "acc": acc}}


if __name__ == "__main__":
    # Small shapes consistent with the module's args.
    N, idim, H, W = 2, 4, 16, 16
    hidden_size, num_labels = 32, 8
    label_smoothing = 0.1

    key = jax.random.PRNGKey(0)
    ks = jax.random.split(key, 10)

    images = jax.random.normal(ks[0], (N, idim, H, W), jnp.float32)
    labels = jax.random.randint(ks[1], (N,), 0, num_labels, jnp.int32)

    h_out = (H - (3 - 1) - 1) // 2 + 1
    w_out = (W - (3 - 1) - 1) // 2 + 1
    flat_dim = hidden_size * h_out * w_out

    params = {
        "conv_w": 0.1 * jax.random.normal(ks[2], (hidden_size, idim, 3, 3), jnp.float32),
        "conv_b": 0.1 * jax.random.normal(ks[3], (hidden_size,), jnp.float32),
        "bn_gamma": 1.0 + 0.1 * jax.random.normal(ks[4], (hidden_size,), jnp.float32),
        "bn_beta": 0.1 * jax.random.normal(ks[5], (hidden_size,), jnp.float32),
        "bn_mean": 0.1 * jax.random.normal(ks[6], (hidden_size,), jnp.float32),
        "bn_var": jnp.abs(1.0 + 0.1 * jax.random.normal(ks[7], (hidden_size,), jnp.float32)),
        "fc_w": 0.02 * jax.random.normal(ks[8], (num_labels, flat_dim), jnp.float32),
        "fc_b": 0.02 * jax.random.normal(ks[9], (num_labels,), jnp.float32),
    }

    out = iccnn_forward(images, labels, params, label_smoothing=label_smoothing)
    jax.block_until_ready(out["loss"])
    jax.block_until_ready(out["logits"])
    print("KERNEL_OK")
</pallas_src>

<mosaic_0001>
module attributes {stable_mosaic.version = 11 : i64} {
  func.func @_conv_bn_relu_kernel(%arg0: i32, %arg1: memref<112x40xbf16, #tpu.memory_space<vmem>>, %arg2: memref<40x32xbf16, #tpu.memory_space<vmem>>, %arg3: memref<1x32xf32, #tpu.memory_space<vmem>>, %arg4: memref<1x32xf32, #tpu.memory_space<vmem>>, %arg5: memref<112x32xbf16, #tpu.memory_space<vmem>>) attributes {dimension_semantics = [#tpu.dimension_semantics<parallel>], iteration_bounds = array<i64: 1>, scalar_prefetch = 0 : i64, scratch_operands = 0 : i64, tpu.core_type = #tpu.core_type<tc>, window_params = [{transform_indices = @transform_0, window_bounds = array<i64: 112, 40>}, {pipeline_mode = #tpu.pipeline_mode<synchronous>, transform_indices = @transform_1, window_bounds = array<i64: 40, 32>}, {pipeline_mode = #tpu.pipeline_mode<synchronous>, transform_indices = @transform_2, window_bounds = array<i64: 1, 32>}, {pipeline_mode = #tpu.pipeline_mode<synchronous>, transform_indices = @transform_3, window_bounds = array<i64: 1, 32>}, {transform_indices = @transform_4, window_bounds = array<i64: 112, 32>}]} {
    %c0 = arith.constant 0 : index
    %c0_0 = arith.constant 0 : index
    %0 = vector.load %arg1[%c0, %c0_0] : memref<112x40xbf16, #tpu.memory_space<vmem>>, vector<112x40xbf16>
    %c0_1 = arith.constant 0 : index
    %c0_2 = arith.constant 0 : index
    %1 = vector.load %arg2[%c0_1, %c0_2] : memref<40x32xbf16, #tpu.memory_space<vmem>>, vector<40x32xbf16>
    %cst = arith.constant dense<0.000000e+00> : vector<112x32xf32>
    %2 = tpu.matmul %0, %1, %cst {dimension_numbers = #tpu.dot_dimension_numbers<[1], [0], [0], [1], [0, 0, 1, 1], [], []>} : vector<112x40xbf16>, vector<40x32xbf16>, vector<112x32xf32> -> vector<112x32xf32>
    %c0_3 = arith.constant 0 : index
    %c0_4 = arith.constant 0 : index
    %3 = vector.load %arg3[%c0_3, %c0_4] : memref<1x32xf32, #tpu.memory_space<vmem>>, vector<1x32xf32>
    %4 = vector.broadcast %3 : vector<1x32xf32> to vector<112x32xf32>
    %5 = arith.mulf %2, %4 : vector<112x32xf32>
    %c0_5 = arith.constant 0 : index
    %c0_6 = arith.constant 0 : index
    %6 = vector.load %arg4[%c0_5, %c0_6] : memref<1x32xf32, #tpu.memory_space<vmem>>, vector<1x32xf32>
    %7 = vector.broadcast %6 : vector<1x32xf32> to vector<112x32xf32>
    %8 = arith.addf %5, %7 : vector<112x32xf32>
    %cst_7 = arith.constant 0.000000e+00 : f32
    %9 = vector.broadcast %cst_7 : f32 to vector<112x32xf32>
    %10 = arith.maximumf %8, %9 : vector<112x32xf32>
    %11 = arith.truncf %10 : vector<112x32xf32> to vector<112x32xbf16>
    %c0_8 = arith.constant 0 : index
    %c0_9 = arith.constant 0 : index
    %12 = vector.load %arg5[%c0_8, %c0_9] : memref<112x32xbf16, #tpu.memory_space<vmem>>, vector<112x32xbf16>
    tpu.vector_store %arg5[%c0_8, %c0_9], %11 {strides = array<i32>} : memref<112x32xbf16, #tpu.memory_space<vmem>>, vector<112x32xbf16>,
    return
  }
  func.func @transform_0(%arg0: i32) -> (i32, i32) {
    %c0_i32 = arith.constant 0 : i32
    %c0_i32_0 = arith.constant 0 : i32
    return %arg0, %c0_i32 : i32, i32
  }
  func.func @transform_1(%arg0: i32) -> (i32, i32) {
    %c0_i32 = arith.constant 0 : i32
    %c0_i32_0 = arith.constant 0 : i32
    %c0_i32_1 = arith.constant 0 : i32
    return %c0_i32, %c0_i32_0 : i32, i32
  }
  func.func @transform_2(%arg0: i32) -> (i32, i32) {
    %c0_i32 = arith.constant 0 : i32
    %c0_i32_0 = arith.constant 0 : i32
    %c0_i32_1 = arith.constant 0 : i32
    return %c0_i32, %c0_i32_0 : i32, i32
  }
  func.func @transform_3(%arg0: i32) -> (i32, i32) {
    %c0_i32 = arith.constant 0 : i32
    %c0_i32_0 = arith.constant 0 : i32
    %c0_i32_1 = arith.constant 0 : i32
    return %c0_i32, %c0_i32_0 : i32, i32
  }
  func.func @transform_4(%arg0: i32) -> (i32, i32) {
    %c0_i32 = arith.constant 0 : i32
    %c0_i32_0 = arith.constant 0 : i32
    return %arg0, %c0_i32 : i32, i32
  }
}

</mosaic_0001>

<bundles_post_ra>
// kernel: tpu_custom_call.1
= control target key start
LH: loop header
LB: loop body
LE: loop exit
PB: predicated region body
PF: predicated region fallthrough
CT: control target
= control target key end

     0   :  { %vm109_vm0 = vcmask 1043456   ;;  %v442_v0 = vmov 0.0   ;;  %vm443_vm1 = vmmov 0   ;;  %vm87_vm2 = vcmask 326656   ;;  %s607_s1 = inlined_call_operand.vmem [shape: bf16[40,32], index: 1, kind: input, shape index: {}]   ;;  %s608_s0 = inlined_call_operand.vmem [shape: bf16[112,40], index: 0, kind: input, shape index: {}]   ;;  %s609_s2 = inlined_call_operand.vmem [shape: f32[1,32], index: 2, kind: input, shape index: {}]   ;;  %s610_s3 = inlined_call_operand.vmem [shape: f32[1,32], index: 3, kind: input, shape index: {}]   ;;  %s611_s4 = inlined_call_operand.vmem [shape: bf16[112,32], index: 4, kind: output, shape index: {}]  }
   0x1   :  { %390 = vmatprep.subr.bf16.mxu0 %v442_v0  ;;  %v432_v1 = vld [vmem:[%s607_s1 + $0x10] ss:$0 sps:$4 sm:$0xff]   ;;  %424 = vmatprep.subr.bf16.mxu1 %v442_v0  ;;  %v433_v3 = vld [vmem:[%s607_s1 + $0x8] sm:$0xff]   ;;  %v434_v4 = vld [vmem:[%s607_s1] sm:$0xff]   ;;  %vm314_vm3 = vcmask 257024  }
   0x2   :  { %396 = vmatprep.mubr.msk.bf16.mxu0 %vm443_vm1, %v442_v0  ;;  %412 = vmatprep.mubr.msk.bf16.mxu1 %vm443_vm1, %v442_v0  ;;  %v111_v2 = vsel %vm109_vm0, %v432_v1, 0  ;;  %v435_v5 = vld [vmem:[%s608_s0] sm:$0xff]   ;;  %v437_v7 = vld [vmem:[%s608_s0 + $0x8] sm:$0xff]   ;;  %v439_v9 = vld [vmem:[%s608_s0 + $0x10] sm:$0xff]  }
   0x3   :  { %391 = vmatpush3.bf16.msra.mxu0 %v111_v2  ;;  %427 = vmatpush3.bf16.msra.mxu1 %v111_v2  ;;  %v436_v6 = vld [vmem:[%s608_s0 + $0x20] sm:$0xff]   ;;  %v438_v8 = vld [vmem:[%s608_s0 + $0x28] sm:$0xff]   ;;  %v440_v10 = vld [vmem:[%s608_s0 + $0x30] sm:$0xff]  }
   0x4   :  { %392 = vmatprep.subr.bf16.mxu0 %v442_v0  ;;  %425 = vmatprep.subr.bf16.mxu1 %v442_v0  ;;  %v441_v11 = vld [vmem:[%s608_s0 + $0x18] sm:$0xff]   ;;  %v516_v12 = vld [vmem:[%s609_s2] ss:$0 sm:$0xff] }
   0x5   :  { %v521_v14 = vld [vmem:[%s610_s3] ss:$0 sm:$0xff] }
   0x7   :  { %393 = vmatpush3.bf16.msra.mxu0 %v433_v3  ;;  %428 = vmatpush3.bf16.msra.mxu1 %v433_v3 }
   0x8   :  { %394 = vmatprep.subr.bf16.mxu0 %v442_v0  ;;  %426 = vmatprep.subr.bf16.mxu1 %v442_v0 }
   0xb   :  { %395 = vmatpush3.bf16.msra.mxu0 %v434_v4  ;;  %429 = vmatpush3.bf16.msra.mxu1 %v434_v4 }
   0xe   :  { %397 = vmatmul.mubr.msk.bf16.vlgmr.msra.gmra.mxu0 %vm87_vm2, %v435_v5  ;;  %413 = vmatmul.mubr.msk.bf16.vlgmr.msra.gmra.mxu1 %vm87_vm2, %v436_v6 }
   0xf   :  { %400 = vmatprep.mubr.msk.bf16.mxu0 %vm443_vm1, %v442_v0  ;;  %416 = vmatprep.mubr.msk.bf16.mxu1 %vm443_vm1, %v442_v0 }
  0x16   :  { %401 = vmatmul.mubr.msk.bf16.gmra.mxu0 %vm87_vm2, %v437_v7  ;;  %417 = vmatmul.mubr.msk.bf16.gmra.mxu1 %vm87_vm2, %v438_v8 }
  0x17   :  { %404 = vmatprep.mubr.msk.bf16.mxu0 %vm443_vm1, %v442_v0  ;;  %420 = vmatprep.mubr.msk.bf16.mxu1 %vm443_vm1, %v442_v0 }
  0x1e   :  { %405 = vmatmul.mubr.msk.bf16.gmra.mxu0 %vm87_vm2, %v439_v9  ;;  %421 = vmatmul.mubr.msk.bf16.gmra.mxu1 %vm87_vm2, %v440_v10 }
  0x1f   :  { %408 = vmatprep.mubr.msk.bf16.mxu0 %vm443_vm1, %v442_v0 }
  0x26   :  { %409 = vmatmul.mubr.msk.bf16.gmra.mxu0 %vm87_vm2, %v441_v11 }
  0xce   :  { %v147_v13 = vpop.f32.mrf.mxu0  ;;  %v179_v15 = vpop.f32.mrf.mxu1 }
  0xcf   :  { %v209_v16 = vmul.f32 %v516_v12, %v147_v13  ;;  %v217_v17 = vmul.f32 %v516_v12, %v179_v15 }
  0xd0   :  { %v398_v18 = vpop.f32.mrf.mxu0  ;;  %v414_v19 = vpop.f32.mrf.mxu1 }
  0xd1   :  { %v230_v20 = vadd.f32 %v521_v14, %v209_v16  ;;  %v238_v21 = vadd.f32 %v521_v14, %v217_v17 }
  0xd2   :  { %v150_v22 = vpop.f32.mrf.mxu0  ;;  %v182_v23 = vpop.f32.mrf.mxu1 }
  0xd3   :  { %v244_v24 = vmax.f32 %v230_v20, 0.0  ;;  %v252_v25 = vmax.f32 %v238_v21, 0.0  ;;  %v210_v26 = vmul.f32 %v516_v12, %v150_v22  ;;  %v218_v27 = vmul.f32 %v516_v12, %v182_v23 }
  0xd4   :  { %v399_v28 = vpop.f32.mrf.mxu0  ;;  %v415_v29 = vpop.f32.mrf.mxu1 }
  0xd5   :  { %v366_v30 = vpack.c.bf16 %v244_v24, %v244_v24  ;;  %v374_v31 = vpack.c.bf16 %v252_v25, %v252_v25  ;;  %v231_v32 = vadd.f32 %v521_v14, %v210_v26  ;;  %v239_v33 = vadd.f32 %v521_v14, %v218_v27 }
  0xd6   :  { %v155_v34 = vpop.f32.mrf.mxu0  ;;  %v187_v35 = vpop.f32.mrf.mxu1 }
  0xd7   :  { %315 = vst.msk [vmem:[%s611_s4] sm:$0xf] %vm314_vm3, %v366_v30  ;;  %323 = vst.msk [vmem:[%s611_s4 + $0x20] sm:$0xf] %vm314_vm3, %v374_v31  ;;  %v245_v36 = vmax.f32 %v231_v32, 0.0  ;;  %v253_v37 = vmax.f32 %v239_v33, 0.0  ;;  %v211_v38 = vmul.f32 %v516_v12, %v155_v34  ;;  %v219_v39 = vmul.f32 %v516_v12, %v187_v35 }
  0xd8   :  { %v402_v40 = vpop.f32.mrf.mxu0  ;;  %v418_v41 = vpop.f32.mrf.mxu1 }
  0xd9   :  { %v367_v42 = vpack.c.bf16 %v245_v36, %v245_v36  ;;  %v375_v43 = vpack.c.bf16 %v253_v37, %v253_v37  ;;  %v232_v44 = vadd.f32 %v521_v14, %v211_v38  ;;  %v240_v45 = vadd.f32 %v521_v14, %v219_v39 }
  0xda   :  { %v158_v46 = vpop.f32.mrf.mxu0  ;;  %v190_v47 = vpop.f32.mrf.mxu1 }
  0xdb   :  { %316 = vst.msk [vmem:[%s611_s4 + $0x4] sm:$0xf] %vm314_vm3, %v367_v42  ;;  %324 = vst.msk [vmem:[%s611_s4 + $0x24] sm:$0xf] %vm314_vm3, %v375_v43  ;;  %v246_v48 = vmax.f32 %v232_v44, 0.0  ;;  %v254_v49 = vmax.f32 %v240_v45, 0.0  ;;  %v212_v50 = vmul.f32 %v516_v12, %v158_v46  ;;  %v220_v51 = vmul.f32 %v516_v12, %v190_v47 }
  0xdc   :  { %v403_v52 = vpop.f32.mrf.mxu0  ;;  %v419_v53 = vpop.f32.mrf.mxu1 }
  0xdd   :  { %v368_v54 = vpack.c.bf16 %v246_v48, %v246_v48  ;;  %v376_v55 = vpack.c.bf16 %v254_v49, %v254_v49  ;;  %v233_v56 = vadd.f32 %v521_v14, %v212_v50  ;;  %v241_v57 = vadd.f32 %v521_v14, %v220_v51 }
  0xde   :  { %v163_v58 = vpop.f32.mrf.mxu0  ;;  %v195_v59 = vpop.f32.mrf.mxu1 }
  0xdf   :  { %317 = vst.msk [vmem:[%s611_s4 + $0x8] sm:$0xf] %vm314_vm3, %v368_v54  ;;  %325 = vst.msk [vmem:[%s611_s4 + $0x28] sm:$0xf] %vm314_vm3, %v376_v55  ;;  %v247_v60 = vmax.f32 %v233_v56, 0.0  ;;  %v255_v61 = vmax.f32 %v241_v57, 0.0  ;;  %v213_v62 = vmul.f32 %v516_v12, %v163_v58  ;;  %v221_v63 = vmul.f32 %v516_v12, %v195_v59 }
  0xe0   :  { %v406_v0 = vpop.f32.mrf.mxu0  ;;  %v422_v1 = vpop.f32.mrf.mxu1 }
  0xe1   :  { %v369_v2 = vpack.c.bf16 %v247_v60, %v247_v60  ;;  %v377_v3 = vpack.c.bf16 %v255_v61, %v255_v61  ;;  %v234_v4 = vadd.f32 %v521_v14, %v213_v62  ;;  %v242_v5 = vadd.f32 %v521_v14, %v221_v63 }
  0xe2   :  { %v166_v6 = vpop.f32.mrf.mxu0  ;;  %v198_v7 = vpop.f32.mrf.mxu1 }
  0xe3   :  { %318 = vst.msk [vmem:[%s611_s4 + $0xc] sm:$0xf] %vm314_vm3, %v369_v2  ;;  %326 = vst.msk [vmem:[%s611_s4 + $0x2c] sm:$0xf] %vm314_vm3, %v377_v3  ;;  %v248_v8 = vmax.f32 %v234_v4, 0.0  ;;  %v256_v9 = vmax.f32 %v242_v5, 0.0  ;;  %v214_v10 = vmul.f32 %v516_v12, %v166_v6  ;;  %v222_v11 = vmul.f32 %v516_v12, %v198_v7 }
  0xe4   :  { %v407_v13 = vpop.f32.mrf.mxu0  ;;  %v423_v15 = vpop.f32.mrf.mxu1 }
  0xe5   :  { %v370_v16 = vpack.c.bf16 %v248_v8, %v248_v8  ;;  %v378_v17 = vpack.c.bf16 %v256_v9, %v256_v9  ;;  %v235_v18 = vadd.f32 %v521_v14, %v214_v10  ;;  %v243_v19 = vadd.f32 %v521_v14, %v222_v11 }
  0xe6   :  { %v171_v20 = vpop.f32.mrf.mxu0 }
  0xe7   :  { %319 = vst.msk [vmem:[%s611_s4 + $0x10] sm:$0xf] %vm314_vm3, %v370_v16  ;;  %327 = vst.msk [vmem:[%s611_s4 + $0x30] sm:$0xf] %vm314_vm3, %v378_v17  ;;  %v249_v21 = vmax.f32 %v235_v18, 0.0  ;;  %v257_v22 = vmax.f32 %v243_v19, 0.0  ;;  %v215_v23 = vmul.f32 %v516_v12, %v171_v20 }
  0xe8   :  { %v410_v24 = vpop.f32.mrf.mxu0 }
  0xe9   :  { %v371_v25 = vpack.c.bf16 %v249_v21, %v249_v21  ;;  %v379_v26 = vpack.c.bf16 %v257_v22, %v257_v22  ;;  %v236_v27 = vadd.f32 %v521_v14, %v215_v23 }
  0xea   :  { %v174_v28 = vpop.f32.mrf.mxu0 }
  0xeb   :  { %320 = vst.msk [vmem:[%s611_s4 + $0x14] sm:$0xf] %vm314_vm3, %v371_v25  ;;  %328 = vst.msk [vmem:[%s611_s4 + $0x34] sm:$0xf] %vm314_vm3, %v379_v26  ;;  %v250_v29 = vmax.f32 %v236_v27, 0.0  ;;  %v216_v30 = vmul.f32 %v516_v12, %v174_v28 }
  0xec   :  { %v411_v31 = vpop.f32.mrf.mxu0 }
  0xed   :  { %v372_v32 = vpack.c.bf16 %v250_v29, %v250_v29  ;;  %v237_v33 = vadd.f32 %v521_v14, %v216_v30 }
  0xef   :  { %321 = vst.msk [vmem:[%s611_s4 + $0x18] sm:$0xf] %vm314_vm3, %v372_v32  ;;  %v251_v34 = vmax.f32 %v237_v33, 0.0 }
  0xf1   :  { %v373_v35 = vpack.c.bf16 %v251_v34, %v251_v34 }
  0xf3   :  { %322 = vst.msk [vmem:[%s611_s4 + $0x1c] sm:$0xf] %vm314_vm3, %v373_v35 }

</bundles_post_ra>
